<compile_context>
chip_gen: v7x
topology: tpu7x:2x2x1
jax: 0.10.0
libtpu: 0.0.40
codegen_flags: <defaults>
</compile_context>

<pallas_src>
import jax
import jax.numpy as jnp
from jax.experimental import pallas as pl
from jax.experimental.pallas import tpu as pltpu


def _round_up(x, m):
    return (x + m - 1) // m * m


_INTERNAL_SCRATCH_BYTES = 2 * 1024 * 1024  # allowance for Mosaic internal scratch


def _vmem_budget_and_limit():
    """Generation-aware VMEM budget (v5e/v6e: 128 MiB physical, v7x: 64 MiB)."""
    try:
        cap = int(pltpu.get_tpu_info().vmem_capacity_bytes)
    except Exception:
        cap = 64 * 1024 * 1024          # conservative fallback (v7x-sized)
    budget = cap * 3 // 4               # ~96 MiB v5e/v6e, ~48 MiB v7x
    limit = min(budget + 8 * 1024 * 1024, cap - 4 * 1024 * 1024)
    return budget, limit


def _padded_bytes(shape, itemsize):
    """VMEM footprint of a block, accounting for (sublane, lane) tiling/padding."""
    if len(shape) == 1:
        return _round_up(shape[0], 128) * itemsize
    sub = 8 * max(1, 4 // itemsize)     # 8 (f32), 16 (bf16), 32 (int8) sublane rows
    lead = 1
    for d in shape[:-2]:
        lead *= d
    return lead * _round_up(shape[-2], sub) * _round_up(shape[-1], 128) * itemsize


def _working_set_bytes(tn, c, hw, out_pad, x_itemsize, w_itemsize):
    x_tile = _padded_bytes((tn, c, hw), x_itemsize)   # bf16 x stream block
    x_f32 = _padded_bytes((tn, c, hw), 4)             # in-kernel f32 upcast for the pool
    pooled = _padded_bytes((tn, c), 4) + _padded_bytes((tn, c), w_itemsize)
    out_tile = _padded_bytes((tn, out_pad), 4)
    w_bytes = _padded_bytes((c, out_pad), w_itemsize)
    b_bytes = _padded_bytes((1, out_pad), 4)
    return (2 * x_tile + 2 * out_tile                 # double-buffered streams
            + 2 * (w_bytes + b_bytes)                 # constant blocks (default 2 buffers)
            + x_f32 + pooled                          # in-kernel temporaries
            + _INTERNAL_SCRATCH_BYTES)


def _choose_tile_n(n, c, hw, out_pad, x_itemsize, w_itemsize, vmem_budget):
    """Largest N-tile that fits VMEM, then capped/balanced for grid pipelining."""
    n_r = _round_up(max(n, 1), 8)
    tn_fit = None
    for cand in (1024, 512, 256, 128, 64, 32, 16, 8):
        cand = min(cand, n_r)
        if _working_set_bytes(cand, c, hw, out_pad, x_itemsize, w_itemsize) <= vmem_budget:
            tn_fit = cand
            break
    if tn_fit is None:
        raise ValueError(
            "FastRCNNPredictor Pallas kernel: even an 8-row tile with "
            f"C={c}, HW={hw}, OUT_pad={out_pad} exceeds the VMEM budget "
            f"({vmem_budget} bytes). Feature map too large for this kernel.")
    # Ensure >= ~4 grid steps for large N (v7x megacore sharding + pipelining),
    # floor of 256 rows (per-step overhead already amortized), then balance the
    # rows across the resulting step count to minimize zero-padding waste.
    tn_cap = min(tn_fit, max(256, _round_up(-(-n_r // 4), 8)), n_r)
    steps = -(-n_r // tn_cap)
    tn = _round_up(-(-n_r // steps), 8)
    return tn                                          # multiple of 8, <= tn_fit


def make_fast_rcnn_predictor(wc, bc, wb, bb, h, w,
                             compute_dtype=jnp.bfloat16,
                             small_n_threshold=64):
    """Prepare fused weights once; return jitted forward(x_nchw) -> (cls, bbox).

    wc: (num_classes, C)              bc: (num_classes,)
    wb: (num_bbox_reg_classes*4, C)   bb: (num_bbox_reg_classes*4,)
    """
    num_classes, c = wc.shape
    num_bbox_out = wb.shape[0]
    hw = h * w
    out = num_classes + num_bbox_out
    out_pad = _round_up(out, 128)       # lane-dense (unmasked) output stores
    inv_hw = float(1.0 / hw)

    # Fuse the two heads: columns [0, num_classes) are cls, the rest bbox.
    w_fused_f32 = jnp.concatenate([wc, wb], axis=0).T.astype(jnp.float32)   # (C, OUT)
    b_fused_f32 = jnp.concatenate([bc, bb]).astype(jnp.float32)             # (OUT,)

    w_pad = jnp.pad(w_fused_f32, ((0, 0), (0, out_pad - out))).astype(compute_dtype)
    b_pad = jnp.pad(b_fused_f32, (0, out_pad - out)).reshape(1, out_pad).astype(jnp.float32)

    vmem_budget, vmem_limit = _vmem_budget_and_limit()
    x_itemsize = jnp.dtype(compute_dtype).itemsize     # x streamed in compute dtype
    w_itemsize = jnp.dtype(compute_dtype).itemsize

    def _kernel(x_ref, w_ref, b_ref, out_ref):
        # x_ref: (TN, C, HW) bf16.  Average pool in f32 (XLU lane reduce,
        # overlaps the MXU); no bf16 elementwise arithmetic -> v5e safe.
        pooled = jnp.sum(x_ref[...].astype(jnp.float32), axis=-1) * inv_hw   # (TN, C) f32
        acc = jnp.dot(pooled.astype(w_ref.dtype), w_ref[...],
                      preferred_element_type=jnp.float32)                    # (TN, OUT_pad) f32
        out_ref[...] = acc + b_ref[...]                                      # lane-dense f32 store

    def forward(x_nchw):
        n = x_nchw.shape[0]
        assert x_nchw.shape[1:] == (c, h, w), "feature-map shape mismatch"

        if n <= small_n_threshold:
            # Tiny-N fast path: pallas_call + padding overhead exceeds the math.
            pooled = jnp.mean(x_nchw.reshape(n, c, hw).astype(jnp.float32), axis=-1)
            fused = pooled @ w_fused_f32 + b_fused_f32
            return fused[:, :num_classes], fused[:, num_classes:out]

        # Cast to bf16 in the wrapper (halves the dominant x DMA; if the
        # upstream feature extractor already emits bf16 this cast is free).
        x3 = x_nchw.reshape(n, c, hw).astype(compute_dtype)

        tn = _choose_tile_n(n, c, hw, out_pad, x_itemsize, w_itemsize, vmem_budget)
        n_pad = _round_up(n, tn)
        if n_pad != n:
            x3 = jnp.pad(x3, ((0, n_pad - n), (0, 0), (0, 0)))

        out_full = pl.pallas_call(
            _kernel,
            out_shape=jax.ShapeDtypeStruct((n_pad, out_pad), jnp.float32),
            grid=(n_pad // tn,),
            in_specs=[
                pl.BlockSpec((tn, c, hw), lambda i: (i, 0, 0)),    # x tile (bf16)
                pl.BlockSpec((c, out_pad), lambda i: (0, 0)),      # fused weight (constant)
                pl.BlockSpec((1, out_pad), lambda i: (0, 0)),      # fused bias (f32, constant)
            ],
            out_specs=pl.BlockSpec((tn, out_pad), lambda i: (i, 0)),
            compiler_params=pltpu.CompilerParams(
                dimension_semantics=("parallel",),                 # megacore-shardable on v7x
                vmem_limit_bytes=vmem_limit,
            ),
        )(x3, w_pad, b_pad)

        # Strip N padding and split the fused / lane-padded output columns.
        cls_logit = out_full[:n, :num_classes]
        bbox_pred = out_full[:n, num_classes:out]
        return cls_logit, bbox_pred

    return jax.jit(forward)


if __name__ == "__main__":
    # Small, module-consistent shapes.
    N, C, H, W = 2, 16, 4, 4           # in_channels = 16
    NUM_CLASSES = 8                    # config.MODEL.ROI_BOX_HEAD.NUM_CLASSES
    CLS_AGNOSTIC = False
    NUM_BBOX_REG_CLASSES = 2 if CLS_AGNOSTIC else NUM_CLASSES
    BBOX_OUT = NUM_BBOX_REG_CLASSES * 4

    key = jax.random.PRNGKey(0)
    k_x, k_wc, k_wb = jax.random.split(key, 3)

    x = jax.random.normal(k_x, (N, C, H, W), dtype=jnp.float32)

    # Deterministic init mirroring the module's __init__:
    #   cls_score.weight ~ N(0, 0.01), bias = 0
    #   bbox_pred.weight ~ N(0, 0.001), bias = 0
    wc = 0.01 * jax.random.normal(k_wc, (NUM_CLASSES, C), dtype=jnp.float32)
    bc = jnp.zeros((NUM_CLASSES,), dtype=jnp.float32)
    wb = 0.001 * jax.random.normal(k_wb, (BBOX_OUT, C), dtype=jnp.float32)
    bb = jnp.zeros((BBOX_OUT,), dtype=jnp.float32)

    # small_n_threshold=0 forces the Pallas path so the kernel is exercised at
    # the demo's tiny N (the production default keeps the XLA tiny-N fast path).
    predictor = make_fast_rcnn_predictor(wc, bc, wb, bb, H, W, small_n_threshold=0)
    cls_logit, bbox_pred = predictor(x)
    jax.block_until_ready((cls_logit, bbox_pred))

    # Pure-JAX f32 reference (bf16 activations/weights on MXU -> loosened tol).
    pooled_ref = jnp.mean(x.reshape(N, C, H * W), axis=-1)
    cls_ref = pooled_ref @ wc.T + bc
    bbox_ref = pooled_ref @ wb.T + bb

    assert cls_logit.shape == (N, NUM_CLASSES)
    assert bbox_pred.shape == (N, BBOX_OUT)
    assert jnp.allclose(cls_logit, cls_ref, rtol=5e-2, atol=1e-3), "cls mismatch"
    assert jnp.allclose(bbox_pred, bbox_ref, rtol=5e-2, atol=1e-3), "bbox mismatch"

    # Also exercise the tiny-N XLA fast path (default threshold, f32 math).
    fast_predictor = make_fast_rcnn_predictor(wc, bc, wb, bb, H, W)
    cls_f, bbox_f = fast_predictor(x)
    jax.block_until_ready((cls_f, bbox_f))
    assert jnp.allclose(cls_f, cls_ref, rtol=1e-4, atol=1e-6), "fast-path cls mismatch"
    assert jnp.allclose(bbox_f, bbox_ref, rtol=1e-4, atol=1e-6), "fast-path bbox mismatch"

    print("KERNEL_OK")
</pallas_src>

<mosaic_0001>
module attributes {stable_mosaic.version = 11 : i64} {
  func.func @_kernel(%arg0: i32, %arg1: memref<8x16x16xbf16, #tpu.memory_space<vmem>>, %arg2: memref<16x128xbf16, #tpu.memory_space<vmem>>, %arg3: memref<1x128xf32, #tpu.memory_space<vmem>>, %arg4: memref<8x128xf32, #tpu.memory_space<vmem>>) attributes {dimension_semantics = [#tpu.dimension_semantics<parallel>], iteration_bounds = array<i64: 1>, scalar_prefetch = 0 : i64, scratch_operands = 0 : i64, tpu.core_type = #tpu.core_type<tc>, window_params = [{transform_indices = @transform_0, window_bounds = array<i64: 8, 16, 16>}, {pipeline_mode = #tpu.pipeline_mode<synchronous>, transform_indices = @transform_1, window_bounds = array<i64: 16, 128>}, {pipeline_mode = #tpu.pipeline_mode<synchronous>, transform_indices = @transform_2, window_bounds = array<i64: 1, 128>}, {transform_indices = @transform_3, window_bounds = array<i64: 8, 128>}]} {
    %c0 = arith.constant 0 : index
    %c0_0 = arith.constant 0 : index
    %c0_1 = arith.constant 0 : index
    %0 = vector.load %arg1[%c0, %c0_0, %c0_1] : memref<8x16x16xbf16, #tpu.memory_space<vmem>>, vector<8x16x16xbf16>
    %1 = arith.extf %0 : vector<8x16x16xbf16> to vector<8x16x16xf32>
    %cst = arith.constant dense<0.000000e+00> : vector<8x16xf32>
    %2 = vector.multi_reduction <add>, %1, %cst [2] : vector<8x16x16xf32> to vector<8x16xf32>
    %cst_2 = arith.constant 6.250000e-02 : f32
    %3 = vector.broadcast %cst_2 : f32 to vector<8x16xf32>
    %4 = arith.mulf %2, %3 : vector<8x16xf32>
    %5 = arith.truncf %4 : vector<8x16xf32> to vector<8x16xbf16>
    %c0_3 = arith.constant 0 : index
    %c0_4 = arith.constant 0 : index
    %6 = vector.load %arg2[%c0_3, %c0_4] : memref<16x128xbf16, #tpu.memory_space<vmem>>, vector<16x128xbf16>
    %cst_5 = arith.constant dense<0.000000e+00> : vector<8x128xf32>
    %7 = tpu.matmul %5, %6, %cst_5 {dimension_numbers = #tpu.dot_dimension_numbers<[1], [0], [0], [1], [0, 0, 1, 1], [], []>} : vector<8x16xbf16>, vector<16x128xbf16>, vector<8x128xf32> -> vector<8x128xf32>
    %c0_6 = arith.constant 0 : index
    %c0_7 = arith.constant 0 : index
    %8 = vector.load %arg3[%c0_6, %c0_7] : memref<1x128xf32, #tpu.memory_space<vmem>>, vector<1x128xf32>
    %9 = vector.broadcast %8 : vector<1x128xf32> to vector<8x128xf32>
    %10 = arith.addf %7, %9 : vector<8x128xf32>
    %c0_8 = arith.constant 0 : index
    %c0_9 = arith.constant 0 : index
    %11 = vector.load %arg4[%c0_8, %c0_9] : memref<8x128xf32, #tpu.memory_space<vmem>>, vector<8x128xf32>
    tpu.vector_store %arg4[%c0_8, %c0_9], %10 {strides = array<i32>} : memref<8x128xf32, #tpu.memory_space<vmem>>, vector<8x128xf32>,
    return
  }
  func.func @transform_0(%arg0: i32) -> (i32, i32, i32) {
    %c0_i32 = arith.constant 0 : i32
    %c0_i32_0 = arith.constant 0 : i32
    %c0_i32_1 = arith.constant 0 : i32
    return %arg0, %c0_i32, %c0_i32_0 : i32, i32, i32
  }
  func.func @transform_1(%arg0: i32) -> (i32, i32) {
    %c0_i32 = arith.constant 0 : i32
    %c0_i32_0 = arith.constant 0 : i32
    %c0_i32_1 = arith.constant 0 : i32
    return %c0_i32, %c0_i32_0 : i32, i32
  }
  func.func @transform_2(%arg0: i32) -> (i32, i32) {
    %c0_i32 = arith.constant 0 : i32
    %c0_i32_0 = arith.constant 0 : i32
    %c0_i32_1 = arith.constant 0 : i32
    return %c0_i32, %c0_i32_0 : i32, i32
  }
  func.func @transform_3(%arg0: i32) -> (i32, i32) {
    %c0_i32 = arith.constant 0 : i32
    %c0_i32_0 = arith.constant 0 : i32
    return %arg0, %c0_i32 : i32, i32
  }
}

</mosaic_0001>

<bundles_post_ra>
// kernel: forward.1
= control target key start
LH: loop header
LB: loop body
LE: loop exit
PB: predicated region body
PF: predicated region fallthrough
CT: control target
= control target key end

     0   :  { %vm47_vm0 = vcmask 130048   ;;  %v351_v40 = vmov 0.0   ;;  %vm352_vm1 = vmmov 0   ;;  %v153_v44 = vlaneseq  ;;  %s452_s0 = inlined_call_operand.vmem [shape: bf16[8,16,16], index: 0, kind: input, shape index: {}]   ;;  %s453_s1 = inlined_call_operand.vmem [shape: bf16[16,128], index: 1, kind: input, shape index: {}]   ;;  %s454_s2 = inlined_call_operand.vmem [shape: f32[1,128], index: 2, kind: input, shape index: {}]   ;;  %s455_s3 = inlined_call_operand.vmem [shape: f32[8,128], index: 3, kind: output, shape index: {}]  }
   0x1   :  { %v333_v0 = vld [vmem:[%s452_s0 + $0x8] sm:$0xff]   ;;  %v302_v1 = vld [vmem:[%s452_s0] sm:$0xff]   ;;  %v334_v6 = vld [vmem:[%s452_s0 + $0x10] sm:$0xff]   ;;  %342 = vmatprep.subr.bf16.mxu0 %v351_v40  ;;  %344 = vmatprep.mubr.msk.bf16.mxu0 %vm352_vm1, %v351_v40  ;;  %vm164_vm2 = vcmask 130112   ;;  %vm229_vm3 = vcmask 1041409   ;;  %vm231_vm4 = vcmask 1042434  }
   0x2   :  { %v307_v2 = vunpack.c.l.bf16 %v333_v0  ;;  %v303_v3 = vunpack.c.l.bf16 %v302_v1  ;;  %v308_v4 = vunpack.c.h.bf16 %v333_v0  ;;  %v304_v5 = vunpack.c.h.bf16 %v302_v1  ;;  %v335_v13 = vld [vmem:[%s452_s0 + $0x18] sm:$0xff]   ;;  %v336_v18 = vld [vmem:[%s452_s0 + $0x20] sm:$0xff]   ;;  %v337_v23 = vld [vmem:[%s452_s0 + $0x28] sm:$0xff]  }
   0x3   :  { %v312_v11 = vunpack.c.h.bf16 %v334_v6  ;;  %v311_v12 = vunpack.c.l.bf16 %v334_v6  ;;  %v316_v16 = vunpack.c.h.bf16 %v335_v13  ;;  %v315_v17 = vunpack.c.l.bf16 %v335_v13  ;;  %v338_v28 = vld [vmem:[%s452_s0 + $0x30] sm:$0xff]   ;;  %v339_v33 = vld [vmem:[%s452_s0 + $0x38] sm:$0xff]   ;;  %v350_v41 = vld [vmem:[%s453_s1] sm:$0xff]  }
   0x4   :  { %v54_v7 = vsel %vm47_vm0, %v307_v2, 0.0  ;;  %v48_v8 = vsel %vm47_vm0, %v303_v3, 0.0  ;;  %v57_v9 = vsel %vm47_vm0, %v308_v4, 0.0  ;;  %v51_v10 = vsel %vm47_vm0, %v304_v5, 0.0  ;;  %343 = vmatpush3.bf16.msra.mxu0 %v350_v41 }
   0x5   :  { %55 = vadd.xlane.f32.xlu1 %v54_v7  ;;  %49 = vadd.xlane.f32.xlu0 %v48_v8  ;;  %v63_v14 = vsel %vm47_vm0, %v312_v11, 0.0  ;;  %v60_v15 = vsel %vm47_vm0, %v311_v12, 0.0  ;;  %v69_v19 = vsel %vm47_vm0, %v316_v16, 0.0  ;;  %v66_v20 = vsel %vm47_vm0, %v315_v17, 0.0 }
   0x6   :  { %v320_v21 = vunpack.c.h.bf16 %v336_v18  ;;  %v319_v22 = vunpack.c.l.bf16 %v336_v18  ;;  %v324_v26 = vunpack.c.h.bf16 %v337_v23  ;;  %v323_v27 = vunpack.c.l.bf16 %v337_v23 }
   0x7   :  { %v328_v31 = vunpack.c.h.bf16 %v338_v28  ;;  %v327_v32 = vunpack.c.l.bf16 %v338_v28  ;;  %v332_v36 = vunpack.c.h.bf16 %v339_v33  ;;  %v331_v37 = vunpack.c.l.bf16 %v339_v33 }
   0x8   :  { %v75_v24 = vsel %vm47_vm0, %v320_v21, 0.0  ;;  %v72_v25 = vsel %vm47_vm0, %v319_v22, 0.0  ;;  %v81_v29 = vsel %vm47_vm0, %v324_v26, 0.0  ;;  %v78_v30 = vsel %vm47_vm0, %v323_v27, 0.0 }
   0x9   :  { %58 = vadd.xlane.f32.xlu1 %v57_v9  ;;  %52 = vadd.xlane.f32.xlu0 %v51_v10  ;;  %v87_v34 = vsel %vm47_vm0, %v328_v31, 0.0  ;;  %v84_v35 = vsel %vm47_vm0, %v327_v32, 0.0  ;;  %v93_v38 = vsel %vm47_vm0, %v332_v36, 0.0  ;;  %v90_v39 = vsel %vm47_vm0, %v331_v37, 0.0 }
   0xa   :  { %v154_v47 = vand.u32 127, %v153_v44  ;;  %v156_v53 = vshrl.u32 %v153_v44, 7  ;;  %vm233_vm5 = vcmask 1043459   ;;  %vm235_vm6 = vcmask 1044484  }
   0xb   :  { %vm237_vm7 = vcmask 1045509   ;;  %vm239_vm8 = vcmask 1046534   ;;  %vm241_vm9 = vcmask 1047559  }
   0xc   :  { %v159_v54 = vadd.s32 4294967288, %v154_v47  ;;  %v416_v0 = vsub.s32 %v154_v47, %v156_v53 }
   0xd   :  { %64 = vadd.xlane.f32.xlu1 %v63_v14  ;;  %61 = vadd.xlane.f32.xlu0 %v60_v15 }
   0xe   :  { %v418_v1 = vsub.s32 %v159_v54, %v156_v53 }
  0x11   :  { %70 = vadd.xlane.f32.xlu1 %v69_v19  ;;  %67 = vadd.xlane.f32.xlu0 %v66_v20 }
  0x15   :  { %76 = vadd.xlane.f32.xlu1 %v75_v24  ;;  %73 = vadd.xlane.f32.xlu0 %v72_v25 }
  0x19   :  { %82 = vadd.xlane.f32.xlu1 %v81_v29  ;;  %79 = vadd.xlane.f32.xlu0 %v78_v30 }
  0x1d   :  { %88 = vadd.xlane.f32.xlu1 %v87_v34  ;;  %85 = vadd.xlane.f32.xlu0 %v84_v35 }
  0x21   :  { %94 = vadd.xlane.f32.xlu1 %v93_v38  ;;  %91 = vadd.xlane.f32.xlu0 %v90_v39 }
  0x92   :  { %v56_v42 = vpop.xlane.xlu1 %55  ;;  %v50_v43 = vpop.xlane.xlu0 %49 }
  0x93   :  { %v98_v51 = vmul.f32 0.0625, %v56_v42  ;;  %v96_v57 = vmul.f32 0.0625, %v50_v43 }
  0x96   :  { %v59_v45 = vpop.xlane.xlu1 %58  ;;  %v53_v46 = vpop.xlane.xlu0 %52 }
  0x97   :  { %v99_v50 = vmul.f32 0.0625, %v59_v45  ;;  %v97_v52 = vmul.f32 0.0625, %v53_v46 }
  0x99   :  { %v113_v58 = vpack.c.bf16 %v99_v50, %v98_v51  ;;  %v112_v61 = vpack.c.bf16 %v97_v52, %v96_v57 }
  0x9a   :  { %v65_v48 = vpop.xlane.xlu1 %64  ;;  %v62_v49 = vpop.xlane.xlu0 %61 }
  0x9b   :  { %v101_v59 = vmul.f32 0.0625, %v65_v48  ;;  %v100_v60 = vmul.f32 0.0625, %v62_v49  ;;  %v139_v4 = vunpack.c.l.b16 %v113_v58  ;;  %v140_v5 = vunpack.c.h.b16 %v113_v58 }
  0x9c   :  { %v137_v9 = vunpack.c.l.b16 %v112_v61  ;;  %v138_v10 = vunpack.c.h.b16 %v112_v61 }
  0x9d   :  { %v114_v8 = vpack.c.bf16 %v101_v59, %v100_v60  ;;  %v169_v15 = vrot.slane %v139_v4, %v416_v0  ;;  %v173_v16 = vrot.slane %v140_v5, %v418_v1 }
  0x9e   :  { %v71_v55 = vpop.xlane.xlu1 %70  ;;  %v68_v56 = vpop.xlane.xlu0 %67  ;;  %v158_v21 = vrot.slane %v137_v9, %v416_v0  ;;  %v163_v22 = vrot.slane %v138_v10, %v418_v1  ;;  %v298_v10 = vld [vmem:[%s454_s2] ss:$0 sm:$0xff] }
  0x9f   :  { %v103_v62 = vmul.f32 0.0625, %v71_v55  ;;  %v102_v63 = vmul.f32 0.0625, %v68_v56  ;;  %v141_v18 = vunpack.c.l.b16 %v114_v8  ;;  %v142_v19 = vunpack.c.h.b16 %v114_v8 }
  0xa0   :  { %v174_v30 = vsel %vm164_vm2, %v173_v16, %v169_v15  ;;  %v165_v37 = vsel %vm164_vm2, %v163_v22, %v158_v21 }
  0xa1   :  { %v115_v11 = vpack.c.bf16 %v103_v62, %v102_v63  ;;  %v178_v33 = vrot.slane %v141_v18, %v416_v0  ;;  %v182_v34 = vrot.slane %v142_v19, %v418_v1  ;;  %v230_v56 = vsel %vm229_vm3, %v174_v30, %v165_v37 }
  0xa2   :  { %v77_v2 = vpop.xlane.xlu1 %76  ;;  %v74_v3 = vpop.xlane.xlu0 %73 }
  0xa3   :  { %v105_v6 = vmul.f32 0.0625, %v77_v2  ;;  %v104_v7 = vmul.f32 0.0625, %v74_v3  ;;  %v143_v23 = vunpack.c.l.b16 %v115_v11  ;;  %v144_v24 = vunpack.c.h.b16 %v115_v11 }
  0xa4   :  { %v183_v51 = vsel %vm164_vm2, %v182_v34, %v178_v33 }
  0xa5   :  { %v116_v12 = vpack.c.bf16 %v105_v6, %v104_v7  ;;  %v187_v38 = vrot.slane %v143_v23, %v416_v0  ;;  %v191_v39 = vrot.slane %v144_v24, %v418_v1  ;;  %v232_v58 = vsel %vm231_vm4, %v183_v51, %v230_v56 }
  0xa6   :  { %v83_v13 = vpop.xlane.xlu1 %82  ;;  %v80_v14 = vpop.xlane.xlu0 %79 }
  0xa7   :  { %v107_v17 = vmul.f32 0.0625, %v83_v13  ;;  %v106_v20 = vmul.f32 0.0625, %v80_v14  ;;  %v145_v25 = vunpack.c.l.b16 %v116_v12  ;;  %v146_v26 = vunpack.c.h.b16 %v116_v12 }
  0xa8   :  { %v192_v52 = vsel %vm164_vm2, %v191_v39, %v187_v38 }
  0xa9   :  { %v117_v27 = vpack.c.bf16 %v107_v17, %v106_v20  ;;  %v196_v41 = vrot.slane %v145_v25, %v416_v0  ;;  %v200_v42 = vrot.slane %v146_v26, %v418_v1  ;;  %v234_v62 = vsel %vm233_vm5, %v192_v52, %v232_v58 }
  0xaa   :  { %v89_v28 = vpop.xlane.xlu1 %88  ;;  %v86_v29 = vpop.xlane.xlu0 %85 }
  0xab   :  { %v109_v31 = vmul.f32 0.0625, %v89_v28  ;;  %v108_v32 = vmul.f32 0.0625, %v86_v29  ;;  %v147_v35 = vunpack.c.l.b16 %v117_v27  ;;  %v148_v36 = vunpack.c.h.b16 %v117_v27 }
  0xac   :  { %v201_v57 = vsel %vm164_vm2, %v200_v42, %v196_v41 }
  0xad   :  { %v118_v40 = vpack.c.bf16 %v109_v31, %v108_v32  ;;  %v205_v43 = vrot.slane %v147_v35, %v416_v0  ;;  %v209_v44 = vrot.slane %v148_v36, %v418_v1  ;;  %v236_v2 = vsel %vm235_vm6, %v201_v57, %v234_v62 }
  0xae   :  { %v95_v45 = vpop.xlane.xlu1 %94  ;;  %v92_v46 = vpop.xlane.xlu0 %91 }
  0xaf   :  { %v149_v47 = vunpack.c.l.b16 %v118_v40  ;;  %v150_v48 = vunpack.c.h.b16 %v118_v40  ;;  %v111_v49 = vmul.f32 0.0625, %v95_v45  ;;  %v110_v50 = vmul.f32 0.0625, %v92_v46 }
  0xb0   :  { %v210_v59 = vsel %vm164_vm2, %v209_v44, %v205_v43 }
  0xb1   :  { %v214_v53 = vrot.slane %v149_v47, %v416_v0  ;;  %v218_v54 = vrot.slane %v150_v48, %v418_v1  ;;  %v119_v55 = vpack.c.bf16 %v111_v49, %v110_v50  ;;  %v238_v5 = vsel %vm237_vm7, %v210_v59, %v236_v2 }
  0xb3   :  { %v151_v60 = vunpack.c.l.b16 %v119_v55  ;;  %v152_v61 = vunpack.c.h.b16 %v119_v55  ;;  %v219_v63 = vsel %vm164_vm2, %v218_v54, %v214_v53 }
  0xb4   :  { %v240_v7 = vsel %vm239_vm8, %v219_v63, %v238_v5 }
  0xb5   :  { %v223_v3 = vrot.slane %v151_v60, %v416_v0  ;;  %v227_v4 = vrot.slane %v152_v61, %v418_v1 }
  0xb7   :  { %v228_v6 = vsel %vm164_vm2, %v227_v4, %v223_v3 }
  0xb8   :  { %v242_v8 = vsel %vm241_vm9, %v228_v6, %v240_v7 }
  0xb9   :  { %v243_v9 = vpack.c.b16 %v242_v8, %v242_v8 }
  0xbb   :  { %345 = vmatmul.mubr.msk.bf16.vlgmr.msra.gmra.mrb[0].mxu0 %vm47_vm0, %v243_v9 }
 0x18e   :  { %v287_v11 = vpop.f32.mrb[0].mxu0 }
 0x18f   :  { %v288_v12 = vadd.f32 %v298_v10, %v287_v11  ;;  %v346_v13 = vpop.f32.mrb[1].mxu0 }
 0x190   :  { %v290_v14 = vpop.f32.mrb[2].mxu0 }
 0x191   :  { %293 = vst [vmem:[%s455_s3] sm:$0xff] %v288_v12  ;;  %v347_v0 = vpop.f32.mrb[3].mxu0 }

</bundles_post_ra>
